<compile_context>
chip_gen: v7x
topology: tpu7x:2x2x1
jax: 0.10.0
libtpu: 0.0.40
codegen_flags: <defaults>
</compile_context>

<pallas_src>
import math
import functools

import jax
import jax.numpy as jnp
from jax import lax
from jax.experimental import pallas as pl
from jax.experimental.pallas import tpu as pltpu


def _self_attention_kernel(x_ref, wq_ref, wk_ref, wv_ref, bq_ref, bk_ref, bv_ref,
                           wo_ref, bo_ref, o_ref, k_sc, v_sc, acc_ref,
                           *, tq, scale, causal):
    # Grid: (batch b, q-tile qi, head h) ; h is innermost so the out-proj accumulator
    # and the output block stay resident across the head reduction.
    qi = pl.program_id(1)
    h = pl.program_id(2)
    n_heads = pl.num_programs(2)
    S = x_ref.shape[0]

    # --- K/V projection for this (batch, head): computed once per batch element
    #     (at q-tile 0) and cached in VMEM scratch for all q tiles.
    @pl.when(qi == 0)
    def _():
        x_bf = x_ref[...].astype(jnp.bfloat16)
        k = jnp.dot(x_bf, wk_ref[...], preferred_element_type=jnp.float32) + bk_ref[...]
        v = jnp.dot(x_bf, wv_ref[...], preferred_element_type=jnp.float32) + bv_ref[...]
        k_sc[h] = k.astype(jnp.bfloat16)        # (S, dh)
        v_sc[h] = v.astype(jnp.bfloat16)        # (S, dh)

    # --- Q projection for this q tile / head (softmax scale folded into q).
    row0 = pl.multiple_of(qi * tq, tq)
    x_t = x_ref[pl.ds(row0, tq), :].astype(jnp.bfloat16)              # (tq, D)
    q = jnp.dot(x_t, wq_ref[...], preferred_element_type=jnp.float32) + bq_ref[...]
    q = (q * scale).astype(jnp.bfloat16)                              # (tq, dh)

    # --- scores: K consumed in transposed form by the MXU (no explicit .T).
    s = lax.dot_general(q, k_sc[h], (((1,), (1,)), ((), ())),
                        preferred_element_type=jnp.float32)           # (tq, S)
    if causal:
        row = row0 + lax.broadcasted_iota(jnp.int32, (tq, S), 0)      # global row index
        col = lax.broadcasted_iota(jnp.int32, (tq, S), 1)
        s = jnp.where(col > row, -jnp.inf, s)

    # --- numerically stable softmax; the division is folded into the (tq, dh) epilogue.
    s = s - jnp.max(s, axis=-1, keepdims=True)
    p = jnp.exp(s)
    denom = jnp.sum(p, axis=-1, keepdims=True)                        # (tq, 1)
    o = jnp.dot(p.astype(jnp.bfloat16), v_sc[h],
                preferred_element_type=jnp.float32)                   # (tq, dh)
    o = o * pl.reciprocal(denom, approx=True)

    # --- per-head slice of the output projection, accumulated over the head axis.
    y = jnp.dot(o.astype(jnp.bfloat16), wo_ref[...],
                preferred_element_type=jnp.float32)                   # (tq, D)

    @pl.when(h == 0)
    def _():
        acc_ref[...] = jnp.zeros_like(acc_ref)
    acc_ref[...] += y

    @pl.when(h == n_heads - 1)
    def _():
        o_ref[...] = (acc_ref[...] + bo_ref[...]).astype(o_ref.dtype)


def _pick_q_tile(S, max_tile=256):
    """Largest q-tile <= max_tile that is a multiple of 8 and divides S; else whole S."""
    if S <= max_tile:
        return S
    start = (max_tile // 8) * 8
    for t in range(start, 7, -8):
        if S % t == 0:
            return t
    return S


def self_attention(x, w_in_t, b_in, w_out_t, b_out, *, n_heads, causal_mask=False):
    """x: (B, S, D); w_in_t: (D, 3D) (already transposed to (in, out)); b_in: (3D,);
    w_out_t: (D, D); b_out: (D,)."""
    B, S, D = x.shape
    dh = D // n_heads
    assert n_heads * dh == D

    tq = _pick_q_tile(S)
    n_q = S // tq

    bf16 = jnp.bfloat16
    f32 = jnp.float32

    # Per-head weight / bias layout prepared outside the kernel (plain XLA ops), so the
    # kernel never lane-slices activations at dh granularity.
    wq = w_in_t[:, 0 * D:1 * D].reshape(D, n_heads, dh).transpose(1, 0, 2).astype(bf16)  # (H, D, dh)
    wk = w_in_t[:, 1 * D:2 * D].reshape(D, n_heads, dh).transpose(1, 0, 2).astype(bf16)
    wv = w_in_t[:, 2 * D:3 * D].reshape(D, n_heads, dh).transpose(1, 0, 2).astype(bf16)
    wo = w_out_t.reshape(n_heads, dh, D).astype(bf16)                                    # (H, dh, D)

    bq = b_in[0 * D:1 * D].reshape(n_heads, 1, dh).astype(f32)
    bk = b_in[1 * D:2 * D].reshape(n_heads, 1, dh).astype(f32)
    bv = b_in[2 * D:3 * D].reshape(n_heads, 1, dh).astype(f32)
    bo = b_out.reshape(1, D).astype(f32)

    kernel = functools.partial(_self_attention_kernel,
                               tq=tq, scale=1.0 / math.sqrt(dh), causal=bool(causal_mask))

    # TODO(synk): for very long S, replace the full-KV (tq, S) score tile with a kv-block
    # loop + online softmax (flash style) and make the q-tile axis "parallel" for v7x.
    return pl.pallas_call(
        kernel,
        out_shape=jax.ShapeDtypeStruct((B, S, D), x.dtype),
        grid_spec=pltpu.PrefetchScalarGridSpec(
            num_scalar_prefetch=0,
            grid=(B, n_q, n_heads),
            in_specs=[
                pl.BlockSpec((None, S, D), lambda b, qi, h: (b, 0, 0)),    # x (full seq)
                pl.BlockSpec((None, D, dh), lambda b, qi, h: (h, 0, 0)),   # Wq[h]
                pl.BlockSpec((None, D, dh), lambda b, qi, h: (h, 0, 0)),   # Wk[h]
                pl.BlockSpec((None, D, dh), lambda b, qi, h: (h, 0, 0)),   # Wv[h]
                pl.BlockSpec((None, 1, dh), lambda b, qi, h: (h, 0, 0)),   # bq[h]
                pl.BlockSpec((None, 1, dh), lambda b, qi, h: (h, 0, 0)),   # bk[h]
                pl.BlockSpec((None, 1, dh), lambda b, qi, h: (h, 0, 0)),   # bv[h]
                pl.BlockSpec((None, dh, D), lambda b, qi, h: (h, 0, 0)),   # Wo[h]
                pl.BlockSpec((1, D), lambda b, qi, h: (0, 0)),             # bo
            ],
            out_specs=pl.BlockSpec((None, tq, D), lambda b, qi, h: (b, qi, 0)),
            scratch_shapes=[
                pltpu.VMEM((n_heads, S, dh), bf16),   # cached K (per head)
                pltpu.VMEM((n_heads, S, dh), bf16),   # cached V (per head)
                pltpu.VMEM((tq, D), f32),             # out-proj accumulator
            ],
        ),
        compiler_params=pltpu.CompilerParams(
            dimension_semantics=("parallel", "arbitrary", "arbitrary"),
            vmem_limit_bytes=64 * 1024 * 1024,
        ),
    )(x, wq, wk, wv, bq, bk, bv, wo, bo)


def self_attention_ref(x, w_in_t, b_in, w_out_t, b_out, *, n_heads, causal_mask=False):
    """Pure-JAX f32 reference matching the PyTorch forward."""
    B, S, D = x.shape
    dh = D // n_heads
    qkv = x @ w_in_t + b_in
    q, k, v = jnp.split(qkv, 3, axis=-1)
    q = q.reshape(B, S, n_heads, dh).transpose(0, 2, 1, 3)
    k = k.reshape(B, S, n_heads, dh).transpose(0, 2, 1, 3)
    v = v.reshape(B, S, n_heads, dh).transpose(0, 2, 1, 3)
    w = jnp.einsum("bhqd,bhkd->bhqk", q, k)
    if causal_mask:
        mask = jnp.triu(jnp.ones((S, S), bool), 1)
        w = jnp.where(mask, -jnp.inf, w)
    w = w / math.sqrt(dh)
    w = jax.nn.softmax(w, axis=-1)
    o = jnp.einsum("bhqk,bhkd->bhqd", w, v)
    o = o.transpose(0, 2, 1, 3).reshape(B, S, D)
    return o @ w_out_t + b_out


if __name__ == "__main__":
    B, S, D, H = 2, 8, 32, 4

    key = jax.random.PRNGKey(0)
    kx, k1, k2, k3, k4 = jax.random.split(key, 5)

    x = jax.random.normal(kx, (B, S, D), dtype=jnp.float32)

    # nn.Linear-style init (uniform +-1/sqrt(fan_in)), deterministic via PRNGKey(0)
    bound_in = 1.0 / math.sqrt(D)
    w_in = jax.random.uniform(k1, (3 * D, D), jnp.float32, -bound_in, bound_in)   # (out, in)
    b_in = jax.random.uniform(k2, (3 * D,), jnp.float32, -bound_in, bound_in)
    w_out = jax.random.uniform(k3, (D, D), jnp.float32, -bound_in, bound_in)
    b_out = jax.random.uniform(k4, (D,), jnp.float32, -bound_in, bound_in)

    # pre-transpose to (in, out) for the kernel wrapper
    w_in_t = w_in.T
    w_out_t = w_out.T

    # Kernel runs bf16 operands on the MXU with f32 accumulation, so compare against the
    # pure-f32 reference with a bf16-appropriate tolerance.
    TOL = 2e-2

    out = jax.block_until_ready(
        self_attention(x, w_in_t, b_in, w_out_t, b_out, n_heads=H, causal_mask=False))
    ref = self_attention_ref(x, w_in_t, b_in, w_out_t, b_out, n_heads=H, causal_mask=False)
    assert out.shape == (B, S, D)
    assert jnp.allclose(out, ref, atol=TOL, rtol=TOL), "mismatch vs reference"

    out_c = jax.block_until_ready(
        self_attention(x, w_in_t, b_in, w_out_t, b_out, n_heads=H, causal_mask=True))
    ref_c = self_attention_ref(x, w_in_t, b_in, w_out_t, b_out, n_heads=H, causal_mask=True)
    assert jnp.allclose(out_c, ref_c, atol=TOL, rtol=TOL), "mismatch vs reference (causal)"

    print("KERNEL_OK")
</pallas_src>

<mosaic_0001>
module attributes {stable_mosaic.version = 11 : i64} {
  func.func @_self_attention_kernel(%arg0: i32, %arg1: i32, %arg2: i32, %arg3: memref<1x8x32xf32, #tpu.memory_space<vmem>>, %arg4: memref<1x32x8xbf16, #tpu.memory_space<vmem>>, %arg5: memref<1x32x8xbf16, #tpu.memory_space<vmem>>, %arg6: memref<1x32x8xbf16, #tpu.memory_space<vmem>>, %arg7: memref<1x1x8xf32, #tpu.memory_space<vmem>>, %arg8: memref<1x1x8xf32, #tpu.memory_space<vmem>>, %arg9: memref<1x1x8xf32, #tpu.memory_space<vmem>>, %arg10: memref<1x8x32xbf16, #tpu.memory_space<vmem>>, %arg11: memref<1x32xf32, #tpu.memory_space<vmem>>, %arg12: memref<1x8x32xf32, #tpu.memory_space<vmem>>, %arg13: memref<4x8x8xbf16, #tpu.memory_space<vmem>>, %arg14: memref<4x8x8xbf16, #tpu.memory_space<vmem>>, %arg15: memref<8x32xf32, #tpu.memory_space<vmem>>) attributes {dimension_semantics = [#tpu.dimension_semantics<parallel>, #tpu.dimension_semantics<arbitrary>, #tpu.dimension_semantics<arbitrary>], iteration_bounds = array<i64: 2, 1, 4>, scalar_prefetch = 0 : i64, scratch_operands = 3 : i64, tpu.core_type = #tpu.core_type<tc>, window_params = [{transform_indices = @transform_0, window_bounds = array<i64: 1, 8, 32>}, {transform_indices = @transform_1, window_bounds = array<i64: 1, 32, 8>}, {transform_indices = @transform_2, window_bounds = array<i64: 1, 32, 8>}, {transform_indices = @transform_3, window_bounds = array<i64: 1, 32, 8>}, {transform_indices = @transform_4, window_bounds = array<i64: 1, 1, 8>}, {transform_indices = @transform_5, window_bounds = array<i64: 1, 1, 8>}, {transform_indices = @transform_6, window_bounds = array<i64: 1, 1, 8>}, {transform_indices = @transform_7, window_bounds = array<i64: 1, 8, 32>}, {pipeline_mode = #tpu.pipeline_mode<synchronous>, transform_indices = @transform_8, window_bounds = array<i64: 1, 32>}, {transform_indices = @transform_9, window_bounds = array<i64: 1, 8, 32>}]} {
    %c0_i32 = arith.constant 0 : i32
    %0 = arith.cmpi eq, %arg1, %c0_i32 : i32
    %1 = arith.extui %0 : i1 to i32
    %c0_i32_0 = arith.constant 0 : i32
    %2 = arith.cmpi ne, %1, %c0_i32_0 : i32
    scf.if %2 {
      %c0_28 = arith.constant 0 : index
      %c0_29 = arith.constant 0 : index
      %c0_30 = arith.constant 0 : index
      %51 = vector.load %arg3[%c0_28, %c0_29, %c0_30] : memref<1x8x32xf32, #tpu.memory_space<vmem>>, vector<1x8x32xf32>
      %52 = vector.shape_cast %51 : vector<1x8x32xf32> to vector<8x32xf32>
      %53 = arith.truncf %52 : vector<8x32xf32> to vector<8x32xbf16>
      %c0_31 = arith.constant 0 : index
      %c0_32 = arith.constant 0 : index
      %c0_33 = arith.constant 0 : index
      %54 = vector.load %arg5[%c0_31, %c0_32, %c0_33] : memref<1x32x8xbf16, #tpu.memory_space<vmem>>, vector<1x32x8xbf16>
      %55 = vector.shape_cast %54 : vector<1x32x8xbf16> to vector<32x8xbf16>
      %cst_34 = arith.constant dense<0.000000e+00> : vector<8x8xf32>
      %56 = tpu.matmul %53, %55, %cst_34 {dimension_numbers = #tpu.dot_dimension_numbers<[1], [0], [0], [1], [0, 0, 1, 1], [], []>} : vector<8x32xbf16>, vector<32x8xbf16>, vector<8x8xf32> -> vector<8x8xf32>
      %c0_35 = arith.constant 0 : index
      %c0_36 = arith.constant 0 : index
      %c0_37 = arith.constant 0 : index
      %57 = vector.load %arg8[%c0_35, %c0_36, %c0_37] : memref<1x1x8xf32, #tpu.memory_space<vmem>>, vector<1x1x8xf32>
      %58 = vector.shape_cast %57 : vector<1x1x8xf32> to vector<1x8xf32>
      %59 = vector.broadcast %58 : vector<1x8xf32> to vector<8x8xf32>
      %60 = arith.addf %56, %59 : vector<8x8xf32>
      %c0_38 = arith.constant 0 : index
      %c0_39 = arith.constant 0 : index
      %c0_40 = arith.constant 0 : index
      %61 = vector.load %arg6[%c0_38, %c0_39, %c0_40] : memref<1x32x8xbf16, #tpu.memory_space<vmem>>, vector<1x32x8xbf16>
      %62 = vector.shape_cast %61 : vector<1x32x8xbf16> to vector<32x8xbf16>
      %cst_41 = arith.constant dense<0.000000e+00> : vector<8x8xf32>
      %63 = tpu.matmul %53, %62, %cst_41 {dimension_numbers = #tpu.dot_dimension_numbers<[1], [0], [0], [1], [0, 0, 1, 1], [], []>} : vector<8x32xbf16>, vector<32x8xbf16>, vector<8x8xf32> -> vector<8x8xf32>
      %c0_42 = arith.constant 0 : index
      %c0_43 = arith.constant 0 : index
      %c0_44 = arith.constant 0 : index
      %64 = vector.load %arg9[%c0_42, %c0_43, %c0_44] : memref<1x1x8xf32, #tpu.memory_space<vmem>>, vector<1x1x8xf32>
      %65 = vector.shape_cast %64 : vector<1x1x8xf32> to vector<1x8xf32>
      %66 = vector.broadcast %65 : vector<1x8xf32> to vector<8x8xf32>
      %67 = arith.addf %63, %66 : vector<8x8xf32>
      %68 = arith.truncf %60 : vector<8x8xf32> to vector<8x8xbf16>
      %69 = arith.index_cast %arg2 : i32 to index
      %c0_45 = arith.constant 0 : index
      %c0_46 = arith.constant 0 : index
      %70 = vector.load %arg13[%69, %c0_45, %c0_46] : memref<4x8x8xbf16, #tpu.memory_space<vmem>>, vector<1x8x8xbf16>
      %71 = vector.shape_cast %70 : vector<1x8x8xbf16> to vector<8x8xbf16>
      %72 = vector.shape_cast %68 : vector<8x8xbf16> to vector<1x8x8xbf16>
      tpu.vector_store %arg13[%69, %c0_45, %c0_46], %72 {strides = array<i32>} : memref<4x8x8xbf16, #tpu.memory_space<vmem>>, vector<1x8x8xbf16>,
      %73 = arith.truncf %67 : vector<8x8xf32> to vector<8x8xbf16>
      %74 = arith.index_cast %arg2 : i32 to index
      %c0_47 = arith.constant 0 : index
      %c0_48 = arith.constant 0 : index
      %75 = vector.load %arg14[%74, %c0_47, %c0_48] : memref<4x8x8xbf16, #tpu.memory_space<vmem>>, vector<1x8x8xbf16>
      %76 = vector.shape_cast %75 : vector<1x8x8xbf16> to vector<8x8xbf16>
      %77 = vector.shape_cast %73 : vector<8x8xbf16> to vector<1x8x8xbf16>
      tpu.vector_store %arg14[%74, %c0_47, %c0_48], %77 {strides = array<i32>} : memref<4x8x8xbf16, #tpu.memory_space<vmem>>, vector<1x8x8xbf16>,
    } else {
    }
    %c8_i32 = arith.constant 8 : i32
    %3 = arith.muli %arg1, %c8_i32 : i32
    %4 = tpu.assume_multiple %3, 8 : i32
    %c0 = arith.constant 0 : index
    %5 = arith.index_cast %4 : i32 to index
    %c0_1 = arith.constant 0 : index
    %6 = vector.load %arg3[%c0, %5, %c0_1] : memref<1x8x32xf32, #tpu.memory_space<vmem>>, vector<1x8x32xf32>
    %7 = vector.shape_cast %6 : vector<1x8x32xf32> to vector<8x32xf32>
    %8 = arith.truncf %7 : vector<8x32xf32> to vector<8x32xbf16>
    %c0_2 = arith.constant 0 : index
    %c0_3 = arith.constant 0 : index
    %c0_4 = arith.constant 0 : index
    %9 = vector.load %arg4[%c0_2, %c0_3, %c0_4] : memref<1x32x8xbf16, #tpu.memory_space<vmem>>, vector<1x32x8xbf16>
    %10 = vector.shape_cast %9 : vector<1x32x8xbf16> to vector<32x8xbf16>
    %cst = arith.constant dense<0.000000e+00> : vector<8x8xf32>
    %11 = tpu.matmul %8, %10, %cst {dimension_numbers = #tpu.dot_dimension_numbers<[1], [0], [0], [1], [0, 0, 1, 1], [], []>} : vector<8x32xbf16>, vector<32x8xbf16>, vector<8x8xf32> -> vector<8x8xf32>
    %c0_5 = arith.constant 0 : index
    %c0_6 = arith.constant 0 : index
    %c0_7 = arith.constant 0 : index
    %12 = vector.load %arg7[%c0_5, %c0_6, %c0_7] : memref<1x1x8xf32, #tpu.memory_space<vmem>>, vector<1x1x8xf32>
    %13 = vector.shape_cast %12 : vector<1x1x8xf32> to vector<1x8xf32>
    %14 = vector.broadcast %13 : vector<1x8xf32> to vector<8x8xf32>
    %15 = arith.addf %11, %14 : vector<8x8xf32>
    %cst_8 = arith.constant 0.353553385 : f32
    %16 = vector.broadcast %cst_8 : f32 to vector<8x8xf32>
    %17 = arith.mulf %15, %16 : vector<8x8xf32>
    %18 = arith.truncf %17 : vector<8x8xf32> to vector<8x8xbf16>
    %19 = arith.index_cast %arg2 : i32 to index
    %c0_9 = arith.constant 0 : index
    %c0_10 = arith.constant 0 : index
    %20 = vector.load %arg13[%19, %c0_9, %c0_10] : memref<4x8x8xbf16, #tpu.memory_space<vmem>>, vector<1x8x8xbf16>
    %21 = vector.shape_cast %20 : vector<1x8x8xbf16> to vector<8x8xbf16>
    %cst_11 = arith.constant dense<0.000000e+00> : vector<8x8xf32>
    %22 = tpu.matmul %18, %21, %cst_11 {dimension_numbers = #tpu.dot_dimension_numbers<[1], [1], [0], [0], [0, 0, 1, 0], [], []>} : vector<8x8xbf16>, vector<8x8xbf16>, vector<8x8xf32> -> vector<8x8xf32>
    %cst_12 = arith.constant dense<0xFF800000> : vector<8xf32>
    %23 = vector.multi_reduction <maximumf>, %22, %cst_12 [1] : vector<8x8xf32> to vector<8xf32>
    %24 = vector.shape_cast %23 : vector<8xf32> to vector<8x1xf32>
    %25 = vector.broadcast %24 : vector<8x1xf32> to vector<8x8xf32>
    %26 = arith.subf %22, %25 : vector<8x8xf32>
    %27 = math.exp %26 : vector<8x8xf32>
    %cst_13 = arith.constant dense<0.000000e+00> : vector<8xf32>
    %28 = vector.multi_reduction <add>, %27, %cst_13 [1] : vector<8x8xf32> to vector<8xf32>
    %29 = vector.shape_cast %28 : vector<8xf32> to vector<8x1xf32>
    %30 = arith.truncf %27 : vector<8x8xf32> to vector<8x8xbf16>
    %31 = arith.index_cast %arg2 : i32 to index
    %c0_14 = arith.constant 0 : index
    %c0_15 = arith.constant 0 : index
    %32 = vector.load %arg14[%31, %c0_14, %c0_15] : memref<4x8x8xbf16, #tpu.memory_space<vmem>>, vector<1x8x8xbf16>
    %33 = vector.shape_cast %32 : vector<1x8x8xbf16> to vector<8x8xbf16>
    %cst_16 = arith.constant dense<0.000000e+00> : vector<8x8xf32>
    %34 = tpu.matmul %30, %33, %cst_16 {dimension_numbers = #tpu.dot_dimension_numbers<[1], [0], [0], [1], [0, 0, 1, 1], [], []>} : vector<8x8xbf16>, vector<8x8xbf16>, vector<8x8xf32> -> vector<8x8xf32>
    %35 = tpu.reciprocal %29 {approx = true} : vector<8x1xf32> -> vector<8x1xf32>
    %36 = vector.broadcast %35 : vector<8x1xf32> to vector<8x8xf32>
    %37 = arith.mulf %34, %36 : vector<8x8xf32>
    %38 = arith.truncf %37 : vector<8x8xf32> to vector<8x8xbf16>
    %c0_17 = arith.constant 0 : index
    %c0_18 = arith.constant 0 : index
    %c0_19 = arith.constant 0 : index
    %39 = vector.load %arg10[%c0_17, %c0_18, %c0_19] : memref<1x8x32xbf16, #tpu.memory_space<vmem>>, vector<1x8x32xbf16>
    %40 = vector.shape_cast %39 : vector<1x8x32xbf16> to vector<8x32xbf16>
    %cst_20 = arith.constant dense<0.000000e+00> : vector<8x32xf32>
    %41 = tpu.matmul %38, %40, %cst_20 {dimension_numbers = #tpu.dot_dimension_numbers<[1], [0], [0], [1], [0, 0, 1, 1], [], []>} : vector<8x8xbf16>, vector<8x32xbf16>, vector<8x32xf32> -> vector<8x32xf32>
    %c0_i32_21 = arith.constant 0 : i32
    %42 = arith.cmpi eq, %arg2, %c0_i32_21 : i32
    %43 = arith.extui %42 : i1 to i32
    %c0_i32_22 = arith.constant 0 : i32
    %44 = arith.cmpi ne, %43, %c0_i32_22 : i32
    scf.if %44 {
      %cst_28 = arith.constant 0.000000e+00 : f32
      %51 = vector.broadcast %cst_28 : f32 to vector<8x32xf32>
      %c0_29 = arith.constant 0 : index
      %c0_30 = arith.constant 0 : index
      %52 = vector.load %arg15[%c0_29, %c0_30] : memref<8x32xf32, #tpu.memory_space<vmem>>, vector<8x32xf32>
      tpu.vector_store %arg15[%c0_29, %c0_30], %51 {strides = array<i32>} : memref<8x32xf32, #tpu.memory_space<vmem>>, vector<8x32xf32>,
    } else {
    }
    %c0_23 = arith.constant 0 : index
    %c0_24 = arith.constant 0 : index
    %45 = vector.load %arg15[%c0_23, %c0_24] : memref<8x32xf32, #tpu.memory_space<vmem>>, vector<8x32xf32>
    %46 = arith.addf %45, %41 : vector<8x32xf32>
    %c0_25 = arith.constant 0 : index
    %c0_26 = arith.constant 0 : index
    %47 = vector.load %arg15[%c0_25, %c0_26] : memref<8x32xf32, #tpu.memory_space<vmem>>, vector<8x32xf32>
    tpu.vector_store %arg15[%c0_25, %c0_26], %46 {strides = array<i32>} : memref<8x32xf32, #tpu.memory_space<vmem>>, vector<8x32xf32>,
    %c3_i32 = arith.constant 3 : i32
    %48 = arith.cmpi eq, %arg2, %c3_i32 : i32
    %49 = arith.extui %48 : i1 to i32
    %c0_i32_27 = arith.constant 0 : i32
    %50 = arith.cmpi ne, %49, %c0_i32_27 : i32
    scf.if %50 {
      %c0_28 = arith.constant 0 : index
      %c0_29 = arith.constant 0 : index
      %51 = vector.load %arg15[%c0_28, %c0_29] : memref<8x32xf32, #tpu.memory_space<vmem>>, vector<8x32xf32>
      %c0_30 = arith.constant 0 : index
      %c0_31 = arith.constant 0 : index
      %52 = vector.load %arg11[%c0_30, %c0_31] : memref<1x32xf32, #tpu.memory_space<vmem>>, vector<1x32xf32>
      %53 = vector.broadcast %52 : vector<1x32xf32> to vector<8x32xf32>
      %54 = arith.addf %51, %53 : vector<8x32xf32>
      %c0_32 = arith.constant 0 : index
      %c0_33 = arith.constant 0 : index
      %c0_34 = arith.constant 0 : index
      %55 = vector.load %arg12[%c0_32, %c0_33, %c0_34] : memref<1x8x32xf32, #tpu.memory_space<vmem>>, vector<1x8x32xf32>
      %56 = vector.shape_cast %55 : vector<1x8x32xf32> to vector<8x32xf32>
      %57 = vector.shape_cast %54 : vector<8x32xf32> to vector<1x8x32xf32>
      tpu.vector_store %arg12[%c0_32, %c0_33, %c0_34], %57 {strides = array<i32>} : memref<1x8x32xf32, #tpu.memory_space<vmem>>, vector<1x8x32xf32>,
    } else {
    }
    return
  }
  func.func @transform_0(%arg0: i32, %arg1: i32, %arg2: i32) -> (i32, i32, i32) {
    %c0_i32 = arith.constant 0 : i32
    %c0_i32_0 = arith.constant 0 : i32
    %c0_i32_1 = arith.constant 0 : i32
    return %arg0, %c0_i32, %c0_i32_0 : i32, i32, i32
  }
  func.func @transform_1(%arg0: i32, %arg1: i32, %arg2: i32) -> (i32, i32, i32) {
    %c0_i32 = arith.constant 0 : i32
    %c0_i32_0 = arith.constant 0 : i32
    %c0_i32_1 = arith.constant 0 : i32
    return %arg2, %c0_i32, %c0_i32_0 : i32, i32, i32
  }
  func.func @transform_2(%arg0: i32, %arg1: i32, %arg2: i32) -> (i32, i32, i32) {
    %c0_i32 = arith.constant 0 : i32
    %c0_i32_0 = arith.constant 0 : i32
    %c0_i32_1 = arith.constant 0 : i32
    return %arg2, %c0_i32, %c0_i32_0 : i32, i32, i32
  }
  func.func @transform_3(%arg0: i32, %arg1: i32, %arg2: i32) -> (i32, i32, i32) {
    %c0_i32 = arith.constant 0 : i32
    %c0_i32_0 = arith.constant 0 : i32
    %c0_i32_1 = arith.constant 0 : i32
    return %arg2, %c0_i32, %c0_i32_0 : i32, i32, i32
  }
  func.func @transform_4(%arg0: i32, %arg1: i32, %arg2: i32) -> (i32, i32, i32) {
    %c0_i32 = arith.constant 0 : i32
    %c0_i32_0 = arith.constant 0 : i32
    %c0_i32_1 = arith.constant 0 : i32
    return %arg2, %c0_i32, %c0_i32_0 : i32, i32, i32
  }
  func.func @transform_5(%arg0: i32, %arg1: i32, %arg2: i32) -> (i32, i32, i32) {
    %c0_i32 = arith.constant 0 : i32
    %c0_i32_0 = arith.constant 0 : i32
    %c0_i32_1 = arith.constant 0 : i32
    return %arg2, %c0_i32, %c0_i32_0 : i32, i32, i32
  }
  func.func @transform_6(%arg0: i32, %arg1: i32, %arg2: i32) -> (i32, i32, i32) {
    %c0_i32 = arith.constant 0 : i32
    %c0_i32_0 = arith.constant 0 : i32
    %c0_i32_1 = arith.constant 0 : i32
    return %arg2, %c0_i32, %c0_i32_0 : i32, i32, i32
  }
  func.func @transform_7(%arg0: i32, %arg1: i32, %arg2: i32) -> (i32, i32, i32) {
    %c0_i32 = arith.constant 0 : i32
    %c0_i32_0 = arith.constant 0 : i32
    %c0_i32_1 = arith.constant 0 : i32
    return %arg2, %c0_i32, %c0_i32_0 : i32, i32, i32
  }
  func.func @transform_8(%arg0: i32, %arg1: i32, %arg2: i32) -> (i32, i32) {
    %c0_i32 = arith.constant 0 : i32
    %c0_i32_0 = arith.constant 0 : i32
    %c0_i32_1 = arith.constant 0 : i32
    return %c0_i32, %c0_i32_0 : i32, i32
  }
  func.func @transform_9(%arg0: i32, %arg1: i32, %arg2: i32) -> (i32, i32, i32) {
    %c0_i32 = arith.constant 0 : i32
    %c0_i32_0 = arith.constant 0 : i32
    return %arg0, %arg1, %c0_i32 : i32, i32, i32
  }
}

</mosaic_0001>

<bundles_post_ra>
// kernel: tpu_custom_call.1
= control target key start
LH: loop header
LB: loop body
LE: loop exit
PB: predicated region body
PF: predicated region fallthrough
CT: control target
= control target key end

     0   :  { %s2645_s0 = inlined_call_operand.hbm [shape: f32[2,8,32], index: 0, kind: input, shape index: {}]   ;;  %s2646_s1 = inlined_call_operand.hbm [shape: bf16[4,32,8], index: 1, kind: input, shape index: {}]   ;;  %s2647_s2 = inlined_call_operand.hbm [shape: bf16[4,32,8], index: 2, kind: input, shape index: {}]   ;;  %s2648_s3 = inlined_call_operand.hbm [shape: bf16[4,32,8], index: 3, kind: input, shape index: {}]   ;;  %s2649_s4 = inlined_call_operand.hbm [shape: f32[4,1,8], index: 4, kind: input, shape index: {}]   ;;  %s2650_s5 = inlined_call_operand.hbm [shape: f32[4,1,8], index: 5, kind: input, shape index: {}]   ;;  %s2651_s6 = inlined_call_operand.hbm [shape: f32[4,1,8], index: 6, kind: input, shape index: {}]   ;;  %s2652_s7 = inlined_call_operand.hbm [shape: bf16[4,8,32], index: 7, kind: input, shape index: {}]   ;;  %s2653_s8 = inlined_call_operand.hbm [shape: f32[1,32], index: 8, kind: input, shape index: {}]   ;;  %s2654_s9 = inlined_call_operand.hbm [shape: f32[2,8,32], index: 9, kind: output, shape index: {}]  }
   0x1   :  { %2685 = sst [smem:[#allocation40_spill]] %s2645_s0 }
   0x2   :  { %2686 = sst [smem:[#allocation41_spill]] %s2646_s1 }
   0x3   :  { %2687 = sst [smem:[#allocation42_spill]] %s2648_s3 }
   0x4   :  { %2688 = sst [smem:[#allocation43_spill]] %s2650_s5 }
   0x5   :  { %2689 = sst [smem:[#allocation44_spill]] %s2651_s6 }
   0x6   :  { %2690 = sst [smem:[#allocation45_spill]] %s2652_s7 }
   0x7   :  { %2691 = sst [smem:[#allocation46_spill]] %s2653_s8 }
   0x8   :  { %2692 = sst [smem:[#allocation47_spill]] %s2654_s9 }
   0x9   :  { %14 = vsyncpa [#allocation6], 0 }
   0xa   :  { %16 = vsyncpa [#allocation6 + $0x1], 0 }
   0xb   :  { %17 = vsyncpa [#allocation9], 0 }
   0xc   :  { %19 = vsyncpa [#allocation9 + $0x1], 0 }
   0xd   :  { %20 = vsyncpa [#allocation12], 0 }
   0xe   :  { %22 = vsyncpa [#allocation12 + $0x1], 0 }
   0xf   :  { %23 = vsyncpa [#allocation15], 0 }
  0x10   :  { %25 = vsyncpa [#allocation15 + $0x1], 0 }
  0x11   :  { %26 = vsyncpa [#allocation18], 0 }
  0x12   :  { %28 = vsyncpa [#allocation18 + $0x1], 0 }
  0x13   :  { %29 = vsyncpa [#allocation7], 0 }
  0x14   :  { %31 = vsyncpa [#allocation7 + $0x1], 0  ;;  %s2049_s30 = smov 0   ;;  %s2051_s10 = smov 0  }
  0x15   :  { %s2053_s11 = smov 0   ;;  %s2055_s12 = smov 0  }
  0x16   :  { %s2057_s13 = smov 0   ;;  %s2059_s14 = smov 0  }
  0x17   :  { %s2061_s15 = smov 0   ;;  %s2063_s16 = smov 0  }
  0x18   :  { %s2065_s17 = smov 0   ;;  %s2067_s18 = smov 0  }
  0x19   :  { %s2069_s19 = smov 0  }
  0x1a LB: > { %2693 = sst [smem:[#allocation28_spill]] %s1946_s10  ;;  %s2103_s20 = sadd.s32 4294967295, %s1982_s19   ;;  %s1982_s19 = sphi %s2069_s19, %s37_s19   ;;  %s1978_s18 = sphi %s2067_s18, %s2771_s18   ;;  %s1974_s17 = sphi %s2065_s17, %s2770_s17   ;;  %s1970_s16 = sphi %s2063_s16, %s2769_s16   ;;  %s1966_s15 = sphi %s2061_s15, %s2768_s15   ;;  %s1962_s14 = sphi %s2059_s14, %s2767_s14   ;;  %s1958_s13 = sphi %s2057_s13, %s2766_s13   ;;  %s1954_s12 = sphi %s2055_s12, %s2761_s12   ;;  %s1950_s11 = sphi %s2053_s11, %s2765_s11   ;;  %s1946_s10 = sphi %s2051_s10, %s2764_s10   ;;  %s1942_s30 = sphi %s2049_s30, %s2760_s30  }
  0x1b   : > { %2694 = sst [smem:[#allocation29_spill]] %s1954_s12  ;;  %s1295_s21 = sadd.s32 4294967294, %s1982_s19  }
  0x1c   : > { %2695 = sst [smem:[#allocation30_spill]] %s1958_s13  ;;  %p2663_p0 = scmp.eq.s32.totalorder %s1982_s19, 0 }
  0x1d   : > { %2696 = sst [smem:[#allocation31_spill]] %s1966_s15  ;;  %p76_p1 = scmp.ne.s32.totalorder %s1958_s13, %s1954_s12 }
  0x1e   : > { %2697 = sst [smem:[#allocation32_spill]] %s1970_s16  ;;  %p2659_p2 = scmp.eq.s32.totalorder %s2103_s20, 0 }
  0x1f   : > { %2698 = sst [smem:[#allocation33_spill]] %s2103_s20  ;;  %p96_p3 = scmp.ne.s32.totalorder %s1950_s11, %s1946_s10 }
  0x20   : > { %p102_p4 = scmp.ne.s32.totalorder %s1946_s10, %s1942_s30  ;;  %p2116_p5 = por %p2659_p2, %p76_p1 }
  0x21   : > { %p2123_p7 = por %p96_p3, %p2663_p0  ;;  %p311_p9 = scmp.eq.s32.totalorder %s1295_s21, 7 }
  0x22   : > { %s2699_s23 = scalar_select %p2116_p5, 1, 0 }
  0x23   : > { %p2129_p8 = por %p102_p4, %p2659_p2  ;;  %p1296_p10 = scmp.ge.s32.totalorder %s1982_s19, 1 }
  0x24   : > { %2700 = sst [smem:[#allocation34_spill]] %s2699_s23  ;;  %p318_p11 = scmp.lt.s32.totalorder %s1982_s19, 9 }
  0x25   : > { %s2702_s25 = scalar_select %p2129_p8, 1, 0 }
  0x26   : > { %p2135_p12 = por %p311_p9, %p76_p1  ;;  %p2139_p13 = pnand %p1296_p10, %p318_p11 }
  0x27   : > { %2703 = sst [smem:[#allocation35_spill]] %s2702_s25  ;;  %s1984_s28 = smov [#allocation19]  }
  0x28   : > { %s2704_s26 = scalar_select %p2135_p12, 1, 0 }
  0x29   : > { %s2706_s27 = scalar_select %p2139_p13, 1, 0 }
  0x2a   : > { %2705 = sst [smem:[#allocation36_spill]] %s2704_s26  ;;  %s331_s29 = sshll.u32 %s1984_s28, 4  ;;  %s332_s29 = int_to_ptr.vmem [resolvable:$true] %s331_s29 }
  0x2b   : > { %2707 = sst [smem:[#allocation37_spill]] %s2706_s27  ;;  %p1431_p3 = pneg %p2139_p13 }
  0x2c   : > { %p2662_p4 = scmp.lt.s32.totalorder %s1982_s19, 8  ;;  %s2147_s30 = sand.u32 1, %s1982_s19  }
  0x2d   : > { %p2151_p6 = pnand %p1431_p3, %p2659_p2  ;;  %s2710_s8 = sld [smem:[#allocation46_spill]] }
  0x2e   : > { %p2159_p1 = pnand %p2662_p4, %p2123_p7 }
  0x2f   : > { %p1574_p10 = pneg %p2151_p6 }
  0x30   : > { %s2709_s22 = scalar_select %p2159_p1, 1, 0 }
  0x33   : > { %s1572_s12 = scalar_lea.hbm %s2710_s8, 16 }
  0x34   : > { %p1573_p9 = scmp.ne.s32.totalorder %s2710_s8, %s1572_s12  ;;  %p1579_p2 = scmp.lt.u32.totalorder %s1572_s12, %s2710_s8 }
  0x36   : > { %p1575_p11 = pnand %p1574_p10, %p1573_p9 }
  0x38   : > { %p1576_p3 = pneg %p1575_p11 }
  0x3a   : > { %p1581_p7 = pnand %p1579_p2, %p1576_p3 }
  0x3c   : > { %1584 = shalt.err (!%p1581_p7)
}
  0x3d   : > { %s1585_s25 = scalar_lea.vmem %s332_s29, 16  ;;  %s1592_s26 = scalar_lea.vmem %s332_s29, 32 }
  0x3e   : > { %p1586_p4 = scmp.ne.s32.totalorder %s332_s29, %s1585_s25  ;;  %p1593_p8 = scmp.lt.s32.totalorder %s332_s29, %s332_s29 }
  0x3f   : > { %p1594_p5 = scmp.lt.s32.totalorder %s1592_s26, %s1585_s25 }
  0x40   : > { %p1588_p0 = pnand %p1586_p4, %p1574_p10 }
  0x41   : > { %p1595_p13 = por %p1594_p5, %p1593_p8 }
  0x42   : > { %p1589_p12 = pneg %p1588_p0 }
  0x44   : > { %p1596_p1 = pnand %p1595_p13, %p1589_p12 }
  0x46   : > { %1599 = shalt.err (!%p1596_p1)
}
  0x47   : > { %1434 = dma.hbm_to_vmem [thread:$0]  (!%p2151_p6), %s2710_s8, 16, %s332_s29, [#allocation18]  }
  0x48   : > { %s2180_s12 = sand.u32 1, %s1950_s11   ;;  %s2183_s15 = sshll.u32 %s1974_s17, 8 }
  0x49   : > { %s2186_s25 = sshll.u32 %s2180_s12, 4  ;;  %s2711_s1 = sld [smem:[#allocation41_spill]] }
  0x4a   : > { %s364_s26 = scalar_lea.vmem [#allocation8], %s2186_s25  ;;  %p2712_p2 = scmp.ne.s32.totalorder %s2709_s22, 0 }
  0x4b   : > { %s371_s29 = sshll.u32 %s364_s26, 4  ;;  %s2195_s29 = int_to_ptr.vmem [resolvable:$true] %s371_s29 }
  0x4c   : > { %p2202_p5 = pneg %p2712_p2 }
  0x4f   : > { %s2192_s21 = scalar_lea.hbm %s2711_s1, %s2183_s15  ;;  %s1605_s10 = scalar_lea.hbm %s2711_s1, 1024 }
  0x50   : > { %s1600_s16 = scalar_lea.hbm %s2192_s21, 256  ;;  %p1606_p12 = scmp.lt.u32.totalorder %s2192_s21, %s2711_s1 }
  0x51   : > { %p1601_p0 = scmp.ne.s32.totalorder %s2192_s21, %s1600_s16  ;;  %p1607_p13 = scmp.lt.u32.totalorder %s1605_s10, %s1600_s16 }
  0x52   : > { %p1609_p1 = scmp.lt.u32.totalorder %s1600_s16, %s2192_s21 }
  0x53   : > { %p1603_p6 = pnand %p2202_p5, %p1601_p0  ;;  %p1608_p4 = por %p1607_p13, %p1606_p12 }
  0x55   : > { %p1604_p8 = pneg %p1603_p6  ;;  %p1610_p9 = por %p1609_p1, %p1608_p4 }
  0x57   : > { %p1611_p10 = pnand %p1610_p9, %p1604_p8 }
  0x59   : > { %1614 = shalt.err (!%p1611_p10)
}
  0x5a   : > { %s1615_s9 = scalar_lea.vmem %s2195_s29, 256  ;;  %s1985_s28 = smov [#allocation8]  }
  0x5b   : > { %p1616_p11 = scmp.ne.s32.totalorder %s2195_s29, %s1615_s9  ;;  %s1620_s24 = sshll.u32 %s1985_s28, 4  ;;  %s1621_s24 = int_to_ptr.vmem [resolvable:$false] %s1620_s24 }
  0x5c   : > { %s1622_s23 = scalar_lea.vmem %s1621_s24, 512  ;;  %p1623_p0 = scmp.lt.s32.totalorder %s2195_s29, %s1621_s24 }
  0x5d   : > { %p1618_p3 = pnand %p1616_p11, %p2202_p5  ;;  %p1624_p6 = scmp.lt.s32.totalorder %s1622_s23, %s1615_s9 }
  0x5f   : > { %p1619_p7 = pneg %p1618_p3  ;;  %p1625_p12 = por %p1624_p6, %p1623_p0 }
  0x61   : > { %p1626_p13 = pnand %p1625_p12, %p1619_p7 }
  0x63   : > { %1629 = shalt.err (!%p1626_p13)
}
  0x64   : > { %s2675_s10 = smov 64   ;;  %s2678_s16 = smov 4  }
  0x65   : > { %s2714_s26 = scalar_lea.sflag [#allocation9], %s2147_s30  ;;  %s2715_s3 = sld [smem:[#allocation42_spill]] }
  0x66   : > { %1441 = dma.hbm_to_vmem [thread:$0]  (!%p2712_p2), %s2192_s21, 256, %s2195_s29, %s2714_s26, %s2675_s10, %s2675_s10, %s2678_s16  }
  0x67   : > { %s406_s23 = scalar_lea.vmem [#allocation11], %s2186_s25  ;;  %s2238_s27 = sshll.u32 %s1974_s17, 4 }
  0x68   : > { %s413_s1 = sshll.u32 %s406_s23, 4  ;;  %s2674_s7 = scalar_lea.sflag [#allocation12], %s2147_s30  ;;  %s2240_s1 = int_to_ptr.vmem [resolvable:$true] %s413_s1 }
  0x6b   : > { %s2234_s24 = scalar_lea.hbm %s2715_s3, %s2183_s15  ;;  %s1635_s26 = scalar_lea.hbm %s2715_s3, 1024 }
  0x6c   : > { %s1630_s6 = scalar_lea.hbm %s2234_s24, 256  ;;  %p1636_p9 = scmp.lt.u32.totalorder %s2234_s24, %s2715_s3 }
  0x6d   : > { %p1631_p8 = scmp.ne.s32.totalorder %s2234_s24, %s1630_s6  ;;  %p1637_p10 = scmp.lt.u32.totalorder %s1635_s26, %s1630_s6 }
  0x6e   : > { %p1639_p3 = scmp.lt.u32.totalorder %s1630_s6, %s2234_s24 }
  0x6f   : > { %p1633_p4 = pnand %p1631_p8, %p2202_p5  ;;  %p1638_p11 = por %p1637_p10, %p1636_p9 }
  0x71   : > { %p1634_p1 = pneg %p1633_p4  ;;  %p1640_p7 = por %p1639_p3, %p1638_p11 }
  0x73   : > { %p1641_p0 = pnand %p1640_p7, %p1634_p1 }
  0x75   : > { %1644 = shalt.err (!%p1641_p0)
}
  0x76   : > { %s1645_s23 = scalar_lea.vmem %s2240_s1, 256  ;;  %s1988_s21 = smov [#allocation11]  }
  0x77   : > { %p1646_p6 = scmp.ne.s32.totalorder %s2240_s1, %s1645_s23  ;;  %s1650_s29 = sshll.u32 %s1988_s21, 4  ;;  %s1651_s29 = int_to_ptr.vmem [resolvable:$false] %s1650_s29 }
  0x78   : > { %s1652_s9 = scalar_lea.vmem %s1651_s29, 512  ;;  %p1653_p8 = scmp.lt.s32.totalorder %s2240_s1, %s1651_s29 }
  0x79   : > { %p1648_p12 = pnand %p1646_p6, %p2202_p5  ;;  %p1654_p4 = scmp.lt.s32.totalorder %s1652_s9, %s1645_s23 }
  0x7b   : > { %p1649_p13 = pneg %p1648_p12  ;;  %p1655_p9 = por %p1654_p4, %p1653_p8 }
  0x7d   : > { %p1656_p10 = pnand %p1655_p9, %p1649_p13 }
  0x7f   : > { %1659 = shalt.err (!%p1656_p10)
}
  0x80   : > { %1447 = dma.hbm_to_vmem [thread:$0]  (!%p2712_p2), %s2234_s24, 256, %s2240_s1, %s2674_s7, %s2675_s10, %s2675_s10, %s2678_s16  }
  0x81   : > { %s2716_s5 = sld [smem:[#allocation43_spill]]  ;;  %s443_s23 = scalar_lea.vmem [#allocation14], %s2180_s12 }
  0x82   : > { %s450_s21 = sshll.u32 %s443_s23, 4  ;;  %s2677_s29 = scalar_lea.sflag [#allocation15], %s2147_s30  ;;  %s451_s21 = int_to_ptr.vmem [resolvable:$true] %s450_s21 }
  0x87   : > { %s2273_s28 = scalar_lea.hbm %s2716_s5, %s2238_s27  ;;  %s1665_s24 = scalar_lea.hbm %s2716_s5, 64 }
  0x88   : > { %s1660_s9 = scalar_lea.hbm %s2273_s28, 16  ;;  %p1666_p7 = scmp.lt.u32.totalorder %s2273_s28, %s2716_s5 }
  0x89   : > { %p1661_p1 = scmp.ne.s32.totalorder %s2273_s28, %s1660_s9  ;;  %p1667_p0 = scmp.lt.u32.totalorder %s1665_s24, %s1660_s9 }
  0x8a   : > { %p1669_p12 = scmp.lt.u32.totalorder %s1660_s9, %s2273_s28 }
  0x8b   : > { %p1663_p11 = pnand %p1661_p1, %p2202_p5  ;;  %p1668_p6 = por %p1667_p0, %p1666_p7 }
  0x8d   : > { %p1664_p3 = pneg %p1663_p11  ;;  %p1670_p13 = por %p1669_p12, %p1668_p6 }
  0x8f   : > { %p1671_p8 = pnand %p1670_p13, %p1664_p3 }
  0x91   : > { %1674 = shalt.err (!%p1671_p8)
}
  0x92   : > { %s1675_s23 = scalar_lea.vmem %s451_s21, 16  ;;  %s1989_s7 = smov [#allocation14]  }
  0x93   : > { %p1676_p4 = scmp.ne.s32.totalorder %s451_s21, %s1675_s23  ;;  %s1680_s10 = sshll.u32 %s1989_s7, 4  ;;  %s1681_s10 = int_to_ptr.vmem [resolvable:$false] %s1680_s10 }
  0x94   : > { %s1682_s3 = scalar_lea.vmem %s1681_s10, 32  ;;  %p1683_p1 = scmp.lt.s32.totalorder %s451_s21, %s1681_s10 }
  0x95   : > { %p1678_p9 = pnand %p1676_p4, %p2202_p5  ;;  %p1684_p11 = scmp.lt.s32.totalorder %s1682_s3, %s1675_s23 }
  0x97   : > { %p1679_p10 = pneg %p1678_p9  ;;  %p1685_p2 = por %p1684_p11, %p1683_p1 }
  0x99   : > { %p1686_p0 = pnand %p1685_p2, %p1679_p10 }
  0x9b   : > { %1689 = shalt.err (!%p1686_p0)
}
  0x9c   : > { %p2717_p7 = scmp.ne.s32.totalorder %s2709_s22, 0  ;;  %s49_s7 = sadd.s32 1, %s1974_s17 }
  0x9d   : > { %s56_s10 = sadd.s32 1, %s1978_s18  ;;  %p50_p2 = scmp.ge.s32.totalorder %s49_s7, 4 }
  0x9e   : > { %1453 = dma.hbm_to_vmem [thread:$0]  (!%p2717_p7), %s2273_s28, 16, %s451_s21, %s2677_s29  }
  0x9f   : > { %s63_s9 = sadd.s32 1, %s1962_s14  ;;  %p70_p3 = scmp.ne.s32.totalorder %s1962_s14, %s1958_s13 }
  0xa0   : > { %s342_s1 = sand.u32 1, %s1962_s14   ;;  %s2773_s7 = smov (%p50_p2, %s49_s7), 0 }
  0xa1   : > { %2718 = sst [smem:[#allocation38_spill]] %s2773_s7  ;;  %s2775_s10 = smov (!%p50_p2, %s56_s10), %s1978_s18 }
  0xa2   : > { %p2719_p6 = scmp.eq.s32.totalorder %s1982_s19, 0  ;;  %s86_s28 = ssub.s32 %s1974_s17, %s2773_s7 }
  0xa3   : > { %p58_p13 = scmp.ge.s32.totalorder %s2775_s10, 2  ;;  %p87_p8 = scmp.eq.s32.totalorder %s86_s28, 0 }
  0xa4   : > { %p2307_p12 = por %p2719_p6, %p70_p3  ;;  %p2721_p4 = scmp.eq.s32.totalorder %s2103_s20, 7 }
  0xa5   : > { %s2777_s10 = smov (%p58_p13, %s2775_s10), 0  ;;  %s2724_s6 = sadd.s32 1, %s1950_s11 }
  0xa6   : > { %p2315_p9 = por %p2721_p4, %p70_p3  ;;  %2723 = sst [smem:[#allocation39_spill]] %s2777_s10 }
  0xa7   : > { %s2324_s26 = scalar_select %p87_p8, %s1950_s11, %s2724_s6  }
  0xa8   : > { %s2722_s21 = scalar_select %p2315_p9, 1, 0 }
  0xa9   : > { %s60_s23 = ssub.s32 %s1978_s18, %s2777_s10  ;;  %s1299_s3 = sshll.u32 %s342_s1, 3 }
  0xaa   : > { %p61_p10 = scmp.eq.s32.totalorder %s60_s23, 0  ;;  %s1300_s29 = sshll.u32 %s1978_s18, 7 }
  0xab   : > { %s346_s16 = scalar_lea.vmem [#allocation5], %s1299_s3  ;;  %s2725_s0 = sld [smem:[#allocation40_spill]] }
  0xac   : > { %s353_s5 = sshll.u32 %s346_s16, 4  ;;  %p2726_p1 = scmp.lt.s32.totalorder %s1982_s19, 8  ;;  %s2337_s5 = int_to_ptr.vmem [resolvable:$true] %s353_s5 }
  0xad   : > { %s2330_s7 = scalar_select %p61_p10, %s1962_s14, %s63_s9  }
  0xae   : > { %p2343_p11 = pnand %p2726_p1, %p2307_p12  ;;  %s2351_s20 = scalar_lea.hbm %s2647_s2, %s2183_s15 }
  0xaf   : > { %s343_s3 = scalar_lea.sflag [#allocation6], %s342_s1 }
  0xb0   : > { %p1692_p2 = pneg %p2343_p11 }
  0xb1   : > { %s2335_s13 = scalar_lea.hbm %s2725_s0, %s1300_s29  ;;  %s385_s29 = scalar_lea.vmem [#allocation10], %s2186_s25 }
  0xb2   : > { %s392_s23 = sshll.u32 %s385_s29, 4  ;;  %s1690_s28 = scalar_lea.hbm %s2335_s13, 128  ;;  %s2354_s23 = int_to_ptr.vmem [resolvable:$true] %s392_s23 }
  0xb3   : > { %p1691_p0 = scmp.ne.s32.totalorder %s2335_s13, %s1690_s28  ;;  %s1695_s16 = scalar_lea.hbm %s2725_s0, 256 }
  0xb4   : > { %p1696_p12 = scmp.lt.u32.totalorder %s2335_s13, %s2725_s0  ;;  %p1697_p13 = scmp.lt.u32.totalorder %s1695_s16, %s1690_s28 }
  0xb5   : > { %p1693_p3 = pnand %p1692_p2, %p1691_p0  ;;  %p1699_p4 = scmp.lt.u32.totalorder %s1690_s28, %s2335_s13 }
  0xb6   : > { %p1698_p8 = por %p1697_p13, %p1696_p12 }
  0xb7   : > { %p1694_p6 = pneg %p1693_p3 }
  0xb8   : > { %p1700_p10 = por %p1699_p4, %p1698_p8 }
  0xba   : > { %p1701_p1 = pnand %p1700_p10, %p1694_p6 }
  0xbc   : > { %1704 = shalt.err (!%p1701_p1)
}
  0xbd   : > { %s1705_s25 = scalar_lea.vmem %s2337_s5, 128  ;;  %s1990_s10 = smov [#allocation5]  }
  0xbe   : > { %p1706_p0 = scmp.ne.s32.totalorder %s2337_s5, %s1705_s25  ;;  %s1710_s1 = sshll.u32 %s1990_s10, 4  ;;  %s1711_s1 = int_to_ptr.vmem [resolvable:$false] %s1710_s1 }
  0xbf   : > { %s1712_s29 = scalar_lea.vmem %s1711_s1, 256  ;;  %p1713_p7 = scmp.lt.s32.totalorder %s2337_s5, %s1711_s1 }
  0xc0   : > { %p1708_p3 = pnand %p1706_p0, %p1692_p2  ;;  %p1714_p12 = scmp.lt.s32.totalorder %s1712_s29, %s1705_s25 }
  0xc2   : > { %p1709_p9 = pneg %p1708_p3  ;;  %p1715_p13 = por %p1714_p12, %p1713_p7 }
  0xc4   : > { %p1716_p8 = pnand %p1715_p13, %p1709_p9 }
  0xc6   : > { %1719 = shalt.err (!%p1716_p8)
}
  0xc7   : > { %1438 = dma.hbm_to_vmem [thread:$0]  (!%p2343_p11), %s2335_s13, 128, %s2337_s5, %s343_s3  }
  0xc8   : > { %s1720_s28 = scalar_lea.hbm %s2351_s20, 256  ;;  %s1725_s9 = scalar_lea.hbm %s2647_s2, 1024 }
  0xc9   : > { %p1721_p2 = scmp.ne.s32.totalorder %s2351_s20, %s1720_s28  ;;  %p1726_p7 = scmp.lt.u32.totalorder %s2351_s20, %s2647_s2 }
  0xca   : > { %p1727_p9 = scmp.lt.u32.totalorder %s1725_s9, %s1720_s28  ;;  %p1729_p1 = scmp.lt.u32.totalorder %s1720_s28, %s2351_s20 }
  0xcb   : > { %p1723_p6 = pnand %p1721_p2, %p2202_p5 }
  0xcc   : > { %p1728_p10 = por %p1727_p9, %p1726_p7 }
  0xcd   : > { %p1724_p4 = pneg %p1723_p6 }
  0xce   : > { %p1730_p0 = por %p1729_p1, %p1728_p10 }
  0xd0   : > { %p1731_p3 = pnand %p1730_p0, %p1724_p4 }
  0xd2   : > { %1734 = shalt.err (!%p1731_p3)
}
  0xd3   : > { %s1735_s5 = scalar_lea.vmem %s2354_s23, 256  ;;  %s1991_s13 = smov [#allocation10]  }
  0xd4   : > { %p1736_p11 = scmp.ne.s32.totalorder %s2354_s23, %s1735_s5  ;;  %s1740_s6 = sshll.u32 %s1991_s13, 4  ;;  %s1741_s6 = int_to_ptr.vmem [resolvable:$false] %s1740_s6 }
  0xd5   : > { %s1742_s3 = scalar_lea.vmem %s1741_s6, 512  ;;  %p1743_p8 = scmp.lt.s32.totalorder %s2354_s23, %s1741_s6 }
  0xd6   : > { %p1738_p12 = pnand %p1736_p11, %p2202_p5  ;;  %p1744_p2 = scmp.lt.s32.totalorder %s1742_s3, %s1735_s5 }
  0xd8   : > { %p1739_p13 = pneg %p1738_p12  ;;  %p1745_p6 = por %p1744_p2, %p1743_p8 }
  0xda   : > { %p1746_p7 = pnand %p1745_p6, %p1739_p13 }
  0xdc   : > { %1749 = shalt.err (!%p1746_p7)
}
  0xdd   : > { %p2728_p4 = scmp.ne.s32.totalorder %s2709_s22, 0  ;;  %s2729_s10 = smov 4  }
  0xde   : > { %s2730_s1 = smov 64   ;;  %s2731_s29 = scalar_lea.sflag [#allocation9], %s2147_s30 }
  0xdf   : > { %1444 = dma.hbm_to_vmem [thread:$0]  (!%p2728_p4), %s2351_s20, 256, %s2354_s23, %s2731_s29, %s2730_s1, %s2730_s1, %s2729_s10  }
  0xe0   : > { %s2411_s16 = scalar_lea.hbm %s2649_s4, %s2238_s27  ;;  %s426_s9 = scalar_lea.vmem [#allocation13], %s2180_s12 }
  0xe1   : > { %s433_s15 = sshll.u32 %s426_s9, 4  ;;  %s2732_s13 = sld [smem:[#allocation44_spill]]  ;;  %s434_s15 = int_to_ptr.vmem [resolvable:$true] %s433_s15 }
  0xe2   : > { %s1750_s0 = scalar_lea.hbm %s2411_s16, 16  ;;  %s1755_s10 = scalar_lea.hbm %s2649_s4, 64 }
  0xe3   : > { %p1751_p9 = scmp.ne.s32.totalorder %s2411_s16, %s1750_s0  ;;  %p1756_p0 = scmp.lt.u32.totalorder %s2411_s16, %s2649_s4 }
  0xe4   : > { %p1757_p3 = scmp.lt.u32.totalorder %s1755_s10, %s1750_s0  ;;  %p1759_p12 = scmp.lt.u32.totalorder %s1750_s0, %s2411_s16 }
  0xe5   : > { %p1753_p10 = pnand %p1751_p9, %p2202_p5 }
  0xe6   : > { %p1758_p11 = por %p1757_p3, %p1756_p0 }
  0xe7   : > { %s2733_s6 = smov %s2732_s13  ;;  %s2418_s3 = scalar_lea.hbm %s2732_s13, %s2238_s27 }
  0xe8   : > { %p1754_p1 = pneg %p1753_p10  ;;  %p1760_p13 = por %p1759_p12, %p1758_p11 }
  0xea   : > { %p1761_p8 = pnand %p1760_p13, %p1754_p1 }
  0xec   : > { %1764 = shalt.err (!%p1761_p8)
}
  0xed   : > { %s1765_s27 = scalar_lea.vmem %s434_s15, 16  ;;  %s1992_s28 = smov [#allocation13]  }
  0xee   : > { %p1766_p2 = scmp.ne.s32.totalorder %s434_s15, %s1765_s27  ;;  %s1770_s24 = sshll.u32 %s1992_s28, 4  ;;  %s1771_s24 = int_to_ptr.vmem [resolvable:$false] %s1770_s24 }
  0xef   : > { %s1772_s9 = scalar_lea.vmem %s1771_s24, 32  ;;  %p1773_p9 = scmp.lt.s32.totalorder %s434_s15, %s1771_s24 }
  0xf0   : > { %p1768_p6 = pnand %p1766_p2, %p2202_p5  ;;  %p1774_p10 = scmp.lt.s32.totalorder %s1772_s9, %s1765_s27 }
  0xf2   : > { %p1769_p7 = pneg %p1768_p6  ;;  %p1775_p4 = por %p1774_p10, %p1773_p9 }
  0xf4   : > { %p1776_p0 = pnand %p1775_p4, %p1769_p7 }
  0xf6   : > { %1779 = shalt.err (!%p1776_p0)
}
  0xf7   : > { %p2734_p3 = scmp.ne.s32.totalorder %s2709_s22, 0  ;;  %s2735_s0 = scalar_lea.sflag [#allocation12], %s2147_s30 }
  0xf8   : > { %s460_s25 = scalar_lea.vmem [#allocation16], %s2180_s12  ;;  %s1313_s13 = sshll.u32 %s2180_s12, 2 }
  0xf9   : > { %1450 = dma.hbm_to_vmem [thread:$0]  (!%p2734_p3), %s2411_s16, 16, %s434_s15, %s2735_s0  }
  0xfa   : > { %s467_s5 = sshll.u32 %s460_s25, 4  ;;  %s1780_s20 = scalar_lea.hbm %s2418_s3, 16  ;;  %s468_s5 = int_to_ptr.vmem [resolvable:$true] %s467_s5 }
  0xfb   : > { %p1781_p4 = scmp.ne.s32.totalorder %s2418_s3, %s1780_s20  ;;  %s1785_s1 = scalar_lea.hbm %s2733_s6, 64 }
  0xfc   : > { %p1786_p12 = scmp.lt.u32.totalorder %s2418_s3, %s2733_s6  ;;  %p1787_p13 = scmp.lt.u32.totalorder %s1785_s1, %s1780_s20 }
  0xfd   : > { %p1783_p1 = pnand %p1781_p4, %p2202_p5  ;;  %p1789_p2 = scmp.lt.u32.totalorder %s1780_s20, %s2418_s3 }
  0xfe   : > { %p1788_p8 = por %p1787_p13, %p1786_p12 }
  0xff   : > { %p1784_p11 = pneg %p1783_p1 }
 0x100   : > { %p1790_p6 = por %p1789_p2, %p1788_p8 }
 0x102   : > { %p1791_p7 = pnand %p1790_p6, %p1784_p11 }
 0x104   : > { %1794 = shalt.err (!%p1791_p7)
}
 0x105   : > { %s1795_s16 = scalar_lea.vmem %s468_s5, 16  ;;  %s1993_s15 = smov [#allocation16]  }
 0x106   : > { %p1796_p9 = scmp.ne.s32.totalorder %s468_s5, %s1795_s16  ;;  %s1800_s28 = sshll.u32 %s1993_s15, 4  ;;  %s1801_s28 = int_to_ptr.vmem [resolvable:$false] %s1800_s28 }
 0x107   : > { %s1802_s24 = scalar_lea.vmem %s1801_s28, 32  ;;  %p1803_p4 = scmp.lt.s32.totalorder %s468_s5, %s1801_s28 }
 0x108   : > { %p1798_p10 = pnand %p1796_p9, %p2202_p5  ;;  %p1804_p1 = scmp.lt.s32.totalorder %s1802_s24, %s1795_s16 }
 0x10a   : > { %p1799_p0 = pneg %p1798_p10  ;;  %p1805_p3 = por %p1804_p1, %p1803_p4 }
 0x10c   : > { %p1806_p12 = pnand %p1805_p3, %p1799_p0 }
 0x10e   : > { %1809 = shalt.err (!%p1806_p12)
}
 0x10f   : > { %p2736_p13 = scmp.ne.s32.totalorder %s2709_s22, 0  ;;  %s2737_s9 = scalar_lea.sflag [#allocation15], %s2147_s30 }
 0x110   : > { %s1314_s0 = sshll.u32 %s1974_s17, 6  ;;  %s2738_s23 = sld [smem:[#allocation45_spill]] }
 0x111   : > { %1456 = dma.hbm_to_vmem [thread:$0]  (!%p2736_p13), %s2418_s3, 16, %s468_s5, %s2737_s9  }
 0x112   : > { %s478_s1 = scalar_lea.vmem [#allocation17], %s1313_s13  ;;  %s475_s27 = scalar_lea.sflag [#allocation18], %s2147_s30 }
 0x113   : > { %s485_s29 = sshll.u32 %s478_s1, 4  ;;  %s486_s29 = int_to_ptr.vmem [resolvable:$true] %s485_s29 }
 0x116   : > { %s2464_s10 = scalar_lea.hbm %s2738_s23, %s1314_s0  ;;  %s1815_s15 = scalar_lea.hbm %s2738_s23, 256 }
 0x117   : > { %s1810_s16 = scalar_lea.hbm %s2464_s10, 64  ;;  %p1816_p2 = scmp.lt.u32.totalorder %s2464_s10, %s2738_s23 }
 0x118   : > { %p1811_p3 = scmp.ne.s32.totalorder %s2464_s10, %s1810_s16  ;;  %p1817_p6 = scmp.lt.u32.totalorder %s1815_s15, %s1810_s16 }
 0x119   : > { %p1819_p9 = scmp.lt.u32.totalorder %s1810_s16, %s2464_s10 }
 0x11a   : > { %p1813_p11 = pnand %p1811_p3, %p2202_p5  ;;  %p1818_p7 = por %p1817_p6, %p1816_p2 }
 0x11c   : > { %p1814_p8 = pneg %p1813_p11  ;;  %p1820_p10 = por %p1819_p9, %p1818_p7 }
 0x11e   : > { %p1821_p0 = pnand %p1820_p10, %p1814_p8 }
 0x120   : > { %1824 = shalt.err (!%p1821_p0)
}
 0x121   : > { %s1825_s30 = scalar_lea.vmem %s486_s29, 64  ;;  %s1994_s12 = smov [#allocation17]  }
 0x122   : > { %p1826_p4 = scmp.ne.s32.totalorder %s486_s29, %s1825_s30  ;;  %s1830_s13 = sshll.u32 %s1994_s12, 4  ;;  %s1831_s13 = int_to_ptr.vmem [resolvable:$false] %s1830_s13 }
 0x123   : > { %s1832_s9 = scalar_lea.vmem %s1831_s13, 128  ;;  %p1833_p3 = scmp.lt.s32.totalorder %s486_s29, %s1831_s13 }
 0x124   : > { %p1828_p1 = pnand %p1826_p4, %p2202_p5  ;;  %p1834_p11 = scmp.lt.s32.totalorder %s1832_s9, %s1825_s30 }
 0x126   : > { %p1829_p12 = pneg %p1828_p1  ;;  %p1835_p13 = por %p1834_p11, %p1833_p3 }
 0x128   : > { %p1836_p2 = pnand %p1835_p13, %p1829_p12 }
 0x12a   : > { %1839 = shalt.err (!%p1836_p2)
}
 0x12b   : > { %p2739_p6 = scmp.ne.s32.totalorder %s2709_s22, 0  ;;  %s2740_s0 = sld [smem:[#allocation37_spill]] }
 0x12d   : > { %1459 = dma.hbm_to_vmem [thread:$0]  (!%p2739_p6), %s2464_s10, 64, %s486_s29, %s475_s27  }
 0x131   : > { %p2741_p8 = scmp.ne.s32.totalorder %s2740_s0, 0 }
 0x132   : > { %s2742_s25 = sld [smem:[#allocation30_spill]] (!%p2741_p8)  ;;  %s2743_s8 = sld [smem:[#allocation34_spill]] (!%p2741_p8) }
 0x133   : > { %494 = sbr.rel (%p2741_p8) target bundleno = 1426 (0x592), region = 56 }
 0x138   : > { %s2489_s20 = sand.u32 (!%p2741_p8), 1, %s2742_s25   ;;  %p2744_p5 = scmp.ne.s32.totalorder (!%p2741_p8), %s2743_s8, 0 }
 0x139   : > { %s1316_s1 = sshll.u32 (!%p2741_p8), %s2489_s20, 3  ;;  %s497_s16 = scalar_lea.sflag (!%p2741_p8), [#allocation6], %s2489_s20 }
 0x13a   : > { %s2495_s3 = scalar_lea.vmem [#allocation5], %s1316_s1 }
 0x13b   : > { %1913 = dma.done.wait (%p2744_p5), %s497_s16, 128  }
 0x13c   : > { %1915 = vsyncadd (%p2744_p5), %s497_s16, 4294967168  ;;  %s2745_s22 = sld [smem:[#allocation33_spill]]  ;;  %s2746_s10 = sld [smem:[#allocation28_spill]] }
 0x13d   : > { %s2747_s29 = sld [smem:[#allocation35_spill]] }
 0x142   : > { %s505_s27 = sand.u32 1, %s2745_s22   ;;  %s2503_s5 = sand.u32 1, %s2746_s10  }
 0x143   : > { %s2506_s15 = sshll.u32 %s2503_s5, 4  ;;  %s506_s28 = scalar_lea.sflag [#allocation9], %s505_s27 }
 0x144   : > { %s509_s24 = scalar_lea.vmem [#allocation8], %s2506_s15  ;;  %p2748_p13 = scmp.ne.s32.totalorder %s2747_s29, 0 }
 0x146   : > { %1917 = dma.done.wait (%p2748_p13), %s506_s28, 512  }
 0x147   : > { %1919 = vsyncadd (%p2748_p13), %s506_s28, 4294966784  ;;  %s518_s30 = scalar_lea.vmem [#allocation10], %s2506_s15  ;;  %s524_s12 = scalar_lea.sflag [#allocation12], %s505_s27 }
 0x148   : > { %s527_s13 = scalar_lea.vmem [#allocation11], %s2506_s15 }
 0x149   : > { %1921 = dma.done.wait (%p2748_p13), %s524_s12, 272  }
 0x14a   : > { %1923 = vsyncadd (%p2748_p13), %s524_s12, 4294967024  ;;  %s535_s9 = scalar_lea.vmem [#allocation13], %s2503_s5  ;;  %s541_s0 = scalar_lea.sflag [#allocation15], %s505_s27 }
 0x14b   : > { %s543_s25 = scalar_lea.vmem [#allocation14], %s2503_s5 }
 0x14c   : > { %1925 = dma.done.wait (%p2748_p13), %s541_s0, 32  }
 0x14d   : > { %1927 = vsyncadd (%p2748_p13), %s541_s0, 4294967264  ;;  %s1320_s8 = sshll.u32 %s2503_s5, 2  ;;  %s551_s16 = scalar_lea.vmem [#allocation16], %s2503_s5 }
 0x14e   : > { %s557_s10 = scalar_lea.sflag [#allocation18], %s505_s27  ;;  %s2527_s28 = scalar_lea.vmem [#allocation17], %s1320_s8 }
 0x14f   : > { %1929 = dma.done.wait (%p2748_p13), %s557_s10, 64  }
 0x150   : > { %1931 = vsyncadd (%p2748_p13), %s557_s10, 4294967232  ;;  %p2749_p7 = scmp.eq.s32.totalorder %s2745_s22, 0 }
 0x152   : > { %1933 = dma.done.wait (%p2749_p7), [#allocation18], 16   ;;  %p2750_p9 = pmov %p2749_p7 }
 0x153   : > { %v1995_v0 = vmov 0.0   ;;  %vm1996_vm0 = vmmov 0   ;;  %v1562_v1 = vld [vmem:[%s518_s30] sm:$0xff]   ;;  %v1563_v2 = vld [vmem:[%s518_s30 + $0x8] sm:$0xff]   ;;  %vm661_vm1 = vcmask 261120   ;;  %s2751_s22 = sld [smem:[#allocation31_spill]] }
 0x154   : > { %1935 = vsyncadd (%p2750_p9), [#allocation18], 4294967280  ;;  %1367 = vmatprep.subr.bf16.mxu0 %v1995_v0  ;;  %1371 = vmatprep.mubr.msk.bf16.mxu0 %vm1996_vm0, %v1995_v0  ;;  %v636_v3 = vld [vmem:[%s2495_s3] sm:$0xff]  ;;  %v1564_v5 = vld [vmem:[%s509_s24] sm:$0xff]   ;;  %vm771_vm2 = vcmask 60416   ;;  %vm853_vm3 = vcmask 64512  }
 0x155   : > { %1375 = vmatprep.subr.bf16.mxu1 %v1995_v0  ;;  %1379 = vmatprep.mubr.msk.bf16.mxu1 %vm1996_vm0, %v1995_v0  ;;  %v637_v4 = vpack.c.bf16 %v636_v3, %v636_v3  ;;  %v1565_v6 = vld [vmem:[%s509_s24 + $0x8] sm:$0xff]   ;;  %v1566_v7 = vld [vmem:[%s527_s13] sm:$0xff]   ;;  %vm916_vm4 = vcmask 1043456   ;;  %s630_s5 = scalar_lea.vmem [#allocation20], %s1316_s1 }
 0x156   : > { %1368 = vmatpush3.bf16.msra.mxu0 %v1562_v1  ;;  %1376 = vmatpush3.bf16.msra.mxu1 %v1566_v7  ;;  %v1567_v8 = vld [vmem:[%s527_s13 + $0x8] sm:$0xff]  }
 0x157   : > { %1369 = vmatprep.subr.bf16.mxu0 %v1995_v0  ;;  %1377 = vmatprep.subr.bf16.mxu1 %v1995_v0  ;;  %v1323_v9 = vld [vmem:[%s543_s25] ss:$0 sm:$0xff] }
 0x158   : > { %v1333_v16 = vld [vmem:[%s535_s9] ss:$0 sm:$0xff] }
 0x159   : > { %s1331_s3 = sshll.u32 %s2751_s22, 2  ;;  %v1327_v26 = vld [vmem:[%s551_s16] ss:$0 sm:$0xff]  ;;  %p1342_p10 = scmp.ne.s32.totalorder %s2751_s22, 0 }
 0x15a   : > { %1370 = vmatpush3.bf16.msra.mxu0 %v1563_v2  ;;  %1378 = vmatpush3.bf16.msra.mxu1 %v1567_v8  ;;  %s770_s29 = scalar_lea.vmem [#allocation2], %s1331_s3  ;;  %s775_s27 = scalar_lea.vmem [#allocation3], %s1331_s3  ;;  %v963_v46 = vld [vmem:[%s2527_s28] sm:$0xf]  ;;  %v1997_v60 = vmov (!%p1342_p10), 0.0  }
 0x15b   : > { %1383 = vmatprep.subr.bf16.mxu0 %v1995_v0  ;;  %1391 = vmatprep.subr.bf16.mxu1 %v1995_v0  ;;  %v968_v47 = vsel %vm916_vm4, %v963_v46, 0  ;;  %1014 = vst.msk [vmem:[#allocation4] sm:$0xff] (!%p1342_p10), %vm661_vm1, %v1997_v60 }
 0x15d   : > { %1372 = vmatmul.mubr.msk.bf16.vlgmr.msra.gmra.mrb[0].mxu0 %vm661_vm1, %v637_v4  ;;  %1380 = vmatmul.mubr.msk.bf16.vlgmr.msra.gmra.mrb[0].mxu1 %vm661_vm1, %v637_v4 }
 0x15e   : > { %1384 = vmatpush3.bf16.msra.mxu0 %v1564_v5  ;;  %1387 = vmatprep.mubr.msk.bf16.mxu0 %vm1996_vm0, %v1995_v0 }
 0x15f   : > { %1385 = vmatprep.subr.bf16.mxu0 %v1995_v0  ;;  %1393 = vmatprep.mubr.msk.bf16.mxu1 %vm1996_vm0, %v1995_v0 }
 0x162   : > { %1386 = vmatpush3.bf16.msra.mxu0 %v1565_v6 }
 0x163   : > { %1397 = vmatprep.subr.bf16.mxu0 %v1995_v0 }
 0x165   : > { %1388 = vmatmul.mubr.msk.bf16.vlgmr.msra.gmra.mrb[4].mxu0 %vm661_vm1, %v637_v4 }
 0x166   : > { %1399 = vmatprep.mubr.msk.bf16.mxu0 %vm1996_vm0, %v1995_v0 }
 0x230   : > { %v699_v10 = vpop.f32.mrb[0].mxu0  ;;  %v762_v27 = vpop.f32.mrb[0].mxu1 }
 0x231   : > { %v700_v11 = vadd.f32 %v1323_v9, %v699_v10  ;;  %v1373_v12 = vpop.f32.mrb[1].mxu0  ;;  %v1381_v28 = vpop.f32.mrb[1].mxu1  ;;  %v763_v29 = vadd.f32 %v1327_v26, %v762_v27 }
 0x232   : > { %v702_v13 = vpop.f32.mrb[2].mxu0  ;;  %v765_v30 = vpop.f32.mrb[2].mxu1 }
 0x233   : > { %v768_v14 = vpack.c.bf16 %v700_v11, %v700_v11  ;;  %v1374_v15 = vpop.f32.mrb[3].mxu0  ;;  %v1382_v31 = vpop.f32.mrb[3].mxu1  ;;  %v773_v32 = vpack.c.bf16 %v763_v29, %v763_v29 }
 0x235   : > { %772 = vst.msk [vmem:[%s770_s29] sm:$0xf] %vm771_vm2, %v768_v14  ;;  %776 = vst.msk [vmem:[%s775_s27] sm:$0xf] %vm771_vm2, %v773_v32 }
 0x238   : > { %v842_v17 = vpop.f32.mrb[4].mxu0 }
 0x239   : > { %v843_v18 = vadd.f32 %v1333_v16, %v842_v17  ;;  %v1389_v19 = vpop.f32.mrb[5].mxu0 }
 0x23a   : > { %v845_v20 = vpop.f32.mrb[6].mxu0 }
 0x23b   : > { %v1390_v21 = vpop.f32.mrb[7].mxu0  ;;  %v848_v23 = vmul.f32 0.35355338, %v843_v18 }
 0x23c   : > { %v852_v22 = vld [vmem:[%s770_s29] sm:$0xf] }
 0x23d   : > { %v858_v24 = vsel %vm853_vm3, %v852_v22, 0  ;;  %v849_v25 = vpack.c.bf16 %v848_v23, %v848_v23  ;;  %v912_v33 = vld [vmem:[%s775_s27] sm:$0xf] }
 0x23e   : > { %1392 = vmatpush3.bf16.xpose.msra.mxu1 %v858_v24  ;;  %v918_v34 = vsel %vm916_vm4, %v912_v33, 0 }
 0x23f   : > { %1403 = vmatprep.subr.bf16.mxu1 %v1995_v0  ;;  %1398 = vmatpush3.bf16.msra.mxu0 %v918_v34 }
 0x245   : > { %1394 = vmatmul.mubr.msk.bf16.vlgmr.msra.gmra.mrb[4].mxu1 %vm853_vm3, %v849_v25 }
 0x246   : > { %1405 = vmatprep.mubr.msk.bf16.mxu1 %vm1996_vm0, %v1995_v0  ;;  %1404 = vmatpush3.bf16.msra.mxu1 %v968_v47 }
 0x318   : > { %v894_v35 = vpop.f32.mrb[4].mxu1 }
 0x319   : > { %v1395_v36 = vpop.f32.mrb[5].mxu1  ;;  %v900_v37 = vsel %vm853_vm3, %v894_v35, -inf }
 0x31a   : > { %901 = vmax.xlane.f32.xlu0 %v900_v37  ;;  %v897_v38 = vpop.f32.mrb[6].mxu1 }
 0x31b   : > { %v1396_v39 = vpop.f32.mrb[7].mxu1 }
 0x3a7   : > { %v902_v40 = vpop.xlane.xlu0 %901 }
 0x3a8   : > { %v903_v41 = vsub.f32 %v894_v35, %v902_v40 }
 0x3aa   : > { %v904_v42 = vmul.f32 1.442695, %v903_v41 }
 0x3ac   : > { %1568 = vpow2.f32 %v904_v42 }
 0x3b6   : > { %v1569_v43 = vpop.eup %1568 }
 0x3b7   : > { %v906_v44 = vsel %vm853_vm3, %v1569_v43, 0.0  ;;  %v909_v45 = vpack.c.bf16 %v1569_v43, %v1569_v43 }
 0x3b8   : > { %907 = vadd.xlane.f32.xlu0 %v906_v44 }
 0x3b9   : > { %1400 = vmatmul.mubr.msk.bf16.vlgmr.msra.gmra.mrb[8].mxu0 %vm853_vm3, %v909_v45 }
 0x445   : > { %v908_v48 = vpop.xlane.xlu0 %907 }
 0x446   : > { %1570 = vrcp.f32 %v908_v48 }
 0x450   : > { %v1571_v49 = vpop.eup %1570 }
 0x48c   : > { %v954_v50 = vpop.f32.mrb[8].mxu0 }
 0x48d   : > { %v961_v51 = vmul.f32 %v1571_v49, %v954_v50  ;;  %v1401_v52 = vpop.f32.mrb[9].mxu0 }
 0x48e   : > { %v957_v53 = vpop.f32.mrb[10].mxu0 }
 0x48f   : > { %v962_v54 = vpack.c.bf16 %v961_v51, %v961_v51  ;;  %v1402_v55 = vpop.f32.mrb[11].mxu0 }
 0x491   : > { %1406 = vmatmul.mubr.msk.bf16.vlgmr.msra.gmra.mrb[8].mxu1 %vm853_vm3, %v962_v54 }
 0x561   : > { %1013 = sbr.rel (%p1342_p10) target bundleno = 1384 (0x568), region = 100 }
 0x564   : > { %v1004_v56 = vpop.f32.mrb[8].mxu1 }
 0x565   : > { %v1407_v57 = vpop.f32.mrb[9].mxu1 }
 0x566   : > { %v1007_v58 = vpop.f32.mrb[10].mxu1 }
 0x567   : > { %v1408_v59 = vpop.f32.mrb[11].mxu1 }
 0x568 PF: > { %v1015_v61 = vld [vmem:[#allocation4] sm:$0xff]  ;;  %s2752_s15 = sld [smem:[#allocation31_spill]] }
 0x569   : > { %v1016_v62 = vadd.f32 %v1015_v61, %v1004_v56 }
 0x56b   : > { %1017 = vst.msk [vmem:[#allocation4] sm:$0xff] %vm661_vm1, %v1016_v62 }
 0x56e   : > { %p1343_p0 = scmp.ne.s32.totalorder %s2752_s15, 3 }
 0x56f   : > { %v1344_v0 = vld [vmem:[#allocation19] ss:$0 sm:$0xff] (!%p1343_p0) }
 0x570   : > { %1021 = sbr.rel (%p1343_p0) target bundleno = 1399 (0x577), region = 104 }
 0x572   : > { %v1022_v63 = vld [vmem:[#allocation4] sm:$0xff] (!%p1343_p0) }
 0x573   : > { %v1030_v1 = vadd.f32 (!%p1343_p0), %v1344_v0, %v1022_v63 }
 0x575   : > { %1031 = vst.msk [vmem:[%s630_s5] sm:$0xff] (!%p1343_p0), %vm661_vm1, %v1030_v1 }
 0x577 PF: > { %s2753_s1 = sld [smem:[#allocation32_spill]]  ;;  %s2754_s13 = sld [smem:[#allocation47_spill]] }
 0x578   : > { %s1047_s25 = sshll.u32 %s630_s5, 4  ;;  %s1033_s8 = scalar_lea.sflag [#allocation7], %s2489_s20  ;;  %s1048_s25 = int_to_ptr.vmem [resolvable:$true] %s1047_s25 }
 0x579   : > { %s1840_s16 = scalar_lea.vmem %s1048_s25, 128  ;;  %p2756_p1 = scmp.ne.s32.totalorder %s2722_s21, 0 }
 0x57a   : > { %p1841_p4 = scmp.ne.s32.totalorder %s1048_s25, %s1840_s16  ;;  %s1998_s10 = smov [#allocation20]  }
 0x57b   : > { %s1844_s28 = sshll.u32 %s1998_s10, 4  ;;  %s1845_s28 = int_to_ptr.vmem [resolvable:$false] %s1844_s28 }
 0x57c   : > { %p1842_p12 = pnand %p1841_p4, %p2756_p1  ;;  %s1846_s22 = scalar_lea.vmem %s1845_s28, 256 }
 0x57d   : > { %s1346_s24 = sshll.u32 %s2753_s1, 7  ;;  %s2755_s9 = smov %s2754_s13 }
 0x57e   : > { %s2588_s0 = scalar_lea.hbm %s2754_s13, %s1346_s24  ;;  %p1843_p3 = pneg %p1842_p12 }
 0x57f   : > { %p1847_p11 = scmp.lt.s32.totalorder %s1048_s25, %s1845_s28  ;;  %p1848_p2 = scmp.lt.s32.totalorder %s1846_s22, %s1840_s16 }
 0x581   : > { %p1849_p6 = por %p1848_p2, %p1847_p11 }
 0x583   : > { %p1850_p8 = pnand %p1849_p6, %p1843_p3 }
 0x585   : > { %1853 = shalt.err (!%p1850_p8)
}
 0x586   : > { %s1854_s20 = scalar_lea.hbm %s2588_s0, 128  ;;  %s1858_s27 = scalar_lea.hbm %s2755_s9, 256 }
 0x587   : > { %p1855_p5 = scmp.ne.s32.totalorder %s2588_s0, %s1854_s20  ;;  %p1859_p9 = scmp.lt.u32.totalorder %s2588_s0, %s2755_s9 }
 0x588   : > { %p1860_p10 = scmp.lt.u32.totalorder %s1858_s27, %s1854_s20  ;;  %p1862_p4 = scmp.lt.u32.totalorder %s1854_s20, %s2588_s0 }
 0x589   : > { %p1856_p13 = pnand %p1855_p5, %p2756_p1 }
 0x58a   : > { %p1861_p0 = por %p1860_p10, %p1859_p9 }
 0x58b   : > { %p1857_p7 = pneg %p1856_p13 }
 0x58c   : > { %p1863_p12 = por %p1862_p4, %p1861_p0 }
 0x58e   : > { %p1864_p3 = pnand %p1863_p12, %p1857_p7 }
 0x590   : > { %1867 = shalt.err (!%p1864_p3)
}
 0x591   : > { %1429 = dma.vmem_to_hbm [thread:$0]  (%p2756_p1), %s1048_s25, 128, %s2588_s0, %s1033_s8  }
 0x592 PF: > { %s2757_s1 = sld [smem:[#allocation29_spill]]  ;;  %s2758_s24 = sld [smem:[#allocation36_spill]] }
 0x593   : > { %p1467_p11 = scmp.ge.s32.totalorder %s1982_s19, 2 }
 0x598   : > { %s1059_s30 = sand.u32 1, %s2757_s1   ;;  %p2759_p2 = scmp.ne.s32.totalorder %s2758_s24, 0 }
 0x599   : > { %s1060_s12 = scalar_lea.sflag [#allocation7], %s1059_s30 }
 0x59a   : > { %p1461_p6 = pnand %p1467_p11, %p2759_p2 }
 0x59c   : > { %1937 = dma.done.wait (!%p1461_p6), %s1060_s12, 128  }
 0x59d   : > { %1939 = vsyncadd (!%p1461_p6), %s1060_s12, 4294967168  ;;  %s37_s19 = sadd.s32 1, %s1982_s19   ;;  %s2760_s30 = sld [smem:[#allocation28_spill]] }
 0x59e   : > { %p34_p8 = scmp.ge.s32.totalorder %s37_s19, 10   ;;  %s2761_s12 = sld [smem:[#allocation30_spill]] }
 0x59f   : > { %s2762_s21 = sld [smem:[#allocation38_spill]]  ;;  %s2763_s0 = sld [smem:[#allocation39_spill]] }
 0x5a0   : > { %s2764_s10 = smov %s1950_s11  ;;  %s2765_s11 = smov %s2324_s26 }
 0x5a1   : > { %s2766_s13 = smov %s1962_s14  ;;  %s2767_s14 = smov %s2330_s7 }
 0x5a2   : > { %s2768_s15 = smov %s1974_s17  ;;  %s2769_s16 = smov %s1978_s18 }
 0x5a3   :  { %36 = sbr.rel (!%p34_p8) target bundleno = 26 (0x1a), region = 207 }
 0x5a5   : > { %s2770_s17 = smov %s2762_s21  ;;  %s2771_s18 = smov %s2763_s0 }
 0x5aa   :  { %1065 = vsyncpa [#allocation6], 1 }
 0x5ab   :  { %1067 = vsyncpa [#allocation6 + $0x1], 1 }
 0x5ac   :  { %1068 = vsyncpa [#allocation9], 1 }
 0x5ad   :  { %1070 = vsyncpa [#allocation9 + $0x1], 1 }
 0x5ae   :  { %1071 = vsyncpa [#allocation12], 1 }
 0x5af   :  { %1073 = vsyncpa [#allocation12 + $0x1], 1 }
 0x5b0   :  { %1074 = vsyncpa [#allocation15], 1 }
 0x5b1   :  { %1076 = vsyncpa [#allocation15 + $0x1], 1 }
 0x5b2   :  { %1077 = vsyncpa [#allocation18], 1 }
 0x5b3   :  { %1079 = vsyncpa [#allocation18 + $0x1], 1 }
 0x5b4   :  { %1080 = vsyncpa [#allocation7], 1 }
 0x5b5   :  { %1082 = vsyncpa [#allocation7 + $0x1], 1 }

</bundles_post_ra>
